<compile_context>
chip_gen: v7x
topology: tpu7x:2x2x1
jax: 0.10.0
libtpu: 0.0.40
codegen_flags: <defaults>
</compile_context>

<pallas_src>
import functools
import math

import jax
import jax.numpy as jnp
from jax.experimental import pallas as pl
from jax.experimental.pallas import tpu as pltpu


# ---------------------------------------------------------------------------
# Pallas kernel: per-batch-tile forward pass (fused streams, bf16 MXU operands)
# ---------------------------------------------------------------------------
def _dueling_dqn_kernel(
    x_ref,       # (tile_b, input_dim) f32   unpadded input tile
    wa_ref,      # (in_rows + 256, 128) bf16 rows [0,input_dim)=W1, rows [in_rows,in_rows+256)=W3
    wb_ref,      # (128, 256) bf16           W2 = [w_v1 | w_a1]
    b_ref,       # (1, 512) f32              [b1(128) | b2(256) | b3(128)]
    out_ref,     # (tile_b, 128) f32         va slab: cols [0,out) = adv_j + value, col out = value
    psum_ref,    # (1, 128) f32              per-tile masked column sums (for the global mean)
    *,
    batch,       # real batch size (static)
    input_dim,   # real input feature dim (static)
    in_rows,     # padded row count of W1 inside wa (static, multiple of 16)
    hidden,      # 128 (static)
    tile_b,      # rows per tile (static)
):
    def leaky_relu(z):
        # nn.LeakyReLU(negative_slope=0.1): max(z, 0.1*z)
        return jnp.maximum(z, 0.1 * z)

    # bf16 operands for the MXU; f32 accumulation via preferred_element_type
    x = x_ref[...].astype(jnp.bfloat16)                       # (tile_b, input_dim)

    # static slices of the packed parameter buffers (no extra DMA)
    w1 = wa_ref[0:input_dim, :]                               # (input_dim, 128) bf16
    w3 = wa_ref[in_rows:in_rows + 2 * hidden, :]              # (256, 128) bf16 block-diag (+value fold)
    w2 = wb_ref[...]                                          # (128, 256) bf16
    b1 = b_ref[:, 0:hidden]                                   # (1, 128) f32
    b2 = b_ref[:, hidden:3 * hidden]                          # (1, 256) f32
    b3 = b_ref[:, 3 * hidden:4 * hidden]                      # (1, 128) f32

    # feature layer: input_dim -> 128
    feat = leaky_relu(
        jnp.dot(x, w1, preferred_element_type=jnp.float32) + b1
    )                                                          # (tile_b, 128) f32

    # fused first layers of value + advantage streams: 128 -> 256
    h = leaky_relu(
        jnp.dot(feat.astype(jnp.bfloat16), w2,
                preferred_element_type=jnp.float32) + b2
    )                                                          # (tile_b, 256) = [hv | ha]

    # fused second layers (block-diagonal, value folded into every adv column):
    #   va[:, j]          = adv_j + value   for j < output_dim
    #   va[:, output_dim] = value
    #   va[:, >out]       = 0 weights / bias
    va = jnp.dot(h.astype(jnp.bfloat16), w3,
                 preferred_element_type=jnp.float32) + b3      # (tile_b, 128) f32

    out_ref[...] = va                                          # lane-dense 128-wide store

    # per-tile masked column sums (rows beyond the real batch excluded);
    # the global advantage mean is assembled in the wrapper epilogue.
    row0 = pl.program_id(0) * tile_b
    row = jax.lax.broadcasted_iota(jnp.int32, va.shape, 0) + row0
    psum_ref[...] = jnp.sum(jnp.where(row < batch, va, 0.0), axis=0, keepdims=True)


@functools.partial(jax.jit, static_argnames=("output_dim",))
def noisy_dueling_dqn_forward(x, packed_params, output_dim):
    """x: (B, input_dim) f32.  packed_params: (wa, wb, biases) from pack_params."""
    wa, wb, biases = packed_params
    B, input_dim = x.shape
    hidden = wb.shape[0]                    # 128
    in_rows = wa.shape[0] - 2 * hidden      # padded W1 row count
    n_pad = wa.shape[1]                     # 128-wide output slab

    # batch tiling: <=512 rows per tile, grid axis parallel (both TCs on v7x)
    tile_b = min(512, max(8, ((B + 7) // 8) * 8))
    num_tiles = pl.cdiv(B, tile_b)

    kernel = functools.partial(
        _dueling_dqn_kernel,
        batch=B, input_dim=input_dim, in_rows=in_rows, hidden=hidden, tile_b=tile_b,
    )

    slab, psums = pl.pallas_call(
        kernel,
        grid=(num_tiles,),
        out_shape=(
            jax.ShapeDtypeStruct((B, n_pad), jnp.float32),          # va slab
            jax.ShapeDtypeStruct((num_tiles, n_pad), jnp.float32),  # per-tile column sums
        ),
        in_specs=[
            pl.BlockSpec((tile_b, input_dim), lambda i: (i, 0)),    # x tile (unpadded lanes)
            pl.BlockSpec(memory_space=pltpu.MemorySpace.VMEM),      # wa (resident)
            pl.BlockSpec(memory_space=pltpu.MemorySpace.VMEM),      # wb (resident)
            pl.BlockSpec(memory_space=pltpu.MemorySpace.VMEM),      # biases (resident)
        ],
        out_specs=(
            pl.BlockSpec((tile_b, n_pad), lambda i: (i, 0)),
            pl.BlockSpec((1, n_pad), lambda i: (i, 0)),
        ),
        compiler_params=pltpu.CompilerParams(
            dimension_semantics=("parallel",),
            vmem_limit_bytes=32 * 1024 * 1024,
        ),
    )(x, wa, wb, biases)

    # tiny XLA epilogue: global advantage mean + subtraction.
    # columns [0, out) of the slab hold adv_j + value; column `out` holds value.
    colsums = jnp.sum(psums, axis=0)                               # (128,)
    value_sum = colsums[output_dim]
    adv_sum = jnp.sum(colsums[:output_dim]) - output_dim * value_sum
    adv_mean = adv_sum / (B * output_dim)
    return slab[:, :output_dim] - adv_mean                         # qvals (B, output_dim)


# ---------------------------------------------------------------------------
# Parameter / noise setup (plain JAX glue, deterministic)
# ---------------------------------------------------------------------------
def _factorized_noisy_linear_params(key, num_in, num_out):
    """Effective (weight, bias) of a FactorizedNoisyLinear in training mode after one
    reset_noise(), deterministically.  Weight returned transposed to (num_in, num_out)."""
    k_mu_w, k_mu_b, k_eps_i, k_eps_j = jax.random.split(key, 4)
    std = 1.0 / math.sqrt(num_in)
    sigma = 0.5 / math.sqrt(num_in)

    mu_w = jax.random.uniform(k_mu_w, (num_out, num_in), jnp.float32, minval=-std, maxval=std)
    mu_b = jax.random.uniform(k_mu_b, (num_out,), jnp.float32, minval=-std, maxval=std)

    def factorize(e):
        return jnp.sign(e) * jnp.sqrt(jnp.abs(e))

    eps_i = factorize(jax.random.normal(k_eps_i, (num_in,), jnp.float32))
    eps_j = factorize(jax.random.normal(k_eps_j, (num_out,), jnp.float32))

    weight = mu_w + sigma * jnp.outer(eps_j, eps_i)   # (num_out, num_in)
    bias = mu_b + sigma * eps_j                       # (num_out,)
    return weight.T, bias[None, :]


def make_params(key, input_dim, output_dim, hidden=128):
    keys = jax.random.split(key, 5)
    w_feat, b_feat = _factorized_noisy_linear_params(keys[0], input_dim, hidden)
    w_v1, b_v1 = _factorized_noisy_linear_params(keys[1], hidden, hidden)
    w_v2, b_v2 = _factorized_noisy_linear_params(keys[2], hidden, 1)
    w_a1, b_a1 = _factorized_noisy_linear_params(keys[3], hidden, hidden)
    w_a2, b_a2 = _factorized_noisy_linear_params(keys[4], hidden, output_dim)
    return [w_feat, b_feat, w_v1, b_v1, w_v2, b_v2, w_a1, b_a1, w_a2, b_a2]


def pack_params(params, input_dim, output_dim, hidden=128):
    """Pack the 10 per-layer tensors into 2 bf16 weight buffers + 1 f32 bias buffer."""
    (w_feat, b_feat, w_v1, b_v1, w_v2, b_v2, w_a1, b_a1, w_a2, b_a2) = params
    assert output_dim + 1 <= 128, "output_dim must fit in one 128-lane slab"
    in_rows = max(16, ((input_dim + 15) // 16) * 16)   # bf16 sublane-tile aligned
    n_pad = 128

    # W1: feature-layer weight, rows zero-padded to in_rows
    w1 = jnp.zeros((in_rows, hidden), jnp.float32).at[:input_dim, :].set(w_feat)

    # W3: block-diagonal fused second layers with the value head folded in:
    #   rows [0,128)   (hv input): w_v2 replicated into cols [0, output_dim]      -> +value
    #   rows [128,256) (ha input): w_a2 into cols [0, output_dim)                 -> +adv_j
    # so column j<out gives adv_j + value and column `out` gives value alone.
    w3 = jnp.zeros((2 * hidden, n_pad), jnp.float32)
    w3 = w3.at[:hidden, :output_dim + 1].set(jnp.broadcast_to(w_v2, (hidden, output_dim + 1)))
    w3 = w3.at[hidden:2 * hidden, :output_dim].set(w_a2)

    wa = jnp.concatenate([w1, w3], axis=0).astype(jnp.bfloat16)   # (in_rows+256, 128)
    wb = jnp.concatenate([w_v1, w_a1], axis=1).astype(jnp.bfloat16)  # (128, 256)

    b3 = jnp.zeros((1, n_pad), jnp.float32)
    b3 = b3.at[:, :output_dim].set(b_a2 + b_v2)                   # adv bias + value bias
    b3 = b3.at[:, output_dim:output_dim + 1].set(b_v2)            # pure value column
    biases = jnp.concatenate([b_feat, b_v1, b_a1, b3], axis=1)    # (1, 512) f32

    return wa, wb, biases


# ---------------------------------------------------------------------------
# Pure-JAX references (self-check)
# ---------------------------------------------------------------------------
def _reference_forward(x, p):
    (w_feat, b_feat, w_v1, b_v1, w_v2, b_v2, w_a1, b_a1, w_a2, b_a2) = p
    leaky = lambda z: jnp.where(z >= 0, z, 0.1 * z)
    feat = leaky(x @ w_feat + b_feat)
    values = (leaky(feat @ w_v1 + b_v1)) @ w_v2 + b_v2
    adv = (leaky(feat @ w_a1 + b_a1)) @ w_a2 + b_a2
    return values + (adv - jnp.mean(adv))


def _reference_forward_bf16(x, p):
    """Emulates the kernel's bf16-operand / f32-accumulate matmuls."""
    (w_feat, b_feat, w_v1, b_v1, w_v2, b_v2, w_a1, b_a1, w_a2, b_a2) = p
    c = lambda a: a.astype(jnp.bfloat16).astype(jnp.float32)
    leaky = lambda z: jnp.where(z >= 0, z, 0.1 * z)
    feat = leaky(c(x) @ c(w_feat) + b_feat)
    values = (c(leaky(c(feat) @ c(w_v1) + b_v1))) @ c(w_v2) + b_v2
    adv = (c(leaky(c(feat) @ c(w_a1) + b_a1))) @ c(w_a2) + b_a2
    return values + (adv - jnp.mean(adv))


if __name__ == "__main__":
    INPUT_DIM = 16
    OUTPUT_DIM = 8
    BATCH = 4

    key = jax.random.PRNGKey(0)
    k_x, k_p = jax.random.split(key)

    x = jax.random.normal(k_x, (BATCH, INPUT_DIM), jnp.float32)
    params = make_params(k_p, INPUT_DIM, OUTPUT_DIM)
    packed = pack_params(params, INPUT_DIM, OUTPUT_DIM)

    qvals = noisy_dueling_dqn_forward(x, packed, OUTPUT_DIM)
    qvals = jax.block_until_ready(qvals)

    ref_bf16 = _reference_forward_bf16(x, params)
    ref_f32 = _reference_forward(x, params)

    assert qvals.shape == (BATCH, OUTPUT_DIM)
    assert jnp.allclose(qvals, ref_bf16, atol=5e-3, rtol=5e-3), "mismatch vs bf16-emulating ref"
    assert jnp.allclose(qvals, ref_f32, atol=5e-2, rtol=5e-2), "mismatch vs f32 ref"

    print("KERNEL_OK")
</pallas_src>

<mosaic_0001>
module attributes {stable_mosaic.version = 11 : i64} {
  func.func @_dueling_dqn_kernel(%arg0: i32, %arg1: memref<8x16xf32, #tpu.memory_space<vmem>>, %arg2: memref<272x128xbf16, #tpu.memory_space<vmem>>, %arg3: memref<128x256xbf16, #tpu.memory_space<vmem>>, %arg4: memref<1x512xf32, #tpu.memory_space<vmem>>, %arg5: memref<8x128xf32, #tpu.memory_space<vmem>>, %arg6: memref<1x128xf32, #tpu.memory_space<vmem>>) attributes {dimension_semantics = [#tpu.dimension_semantics<parallel>], iteration_bounds = array<i64: 1>, scalar_prefetch = 0 : i64, scratch_operands = 0 : i64, tpu.core_type = #tpu.core_type<tc>, window_params = [{transform_indices = @transform_0, window_bounds = array<i64: 8, 16>}, {pipeline_mode = #tpu.pipeline_mode<synchronous>, transform_indices = @transform_1, window_bounds = array<i64: 272, 128>}, {pipeline_mode = #tpu.pipeline_mode<synchronous>, transform_indices = @transform_2, window_bounds = array<i64: 128, 256>}, {pipeline_mode = #tpu.pipeline_mode<synchronous>, transform_indices = @transform_3, window_bounds = array<i64: 1, 512>}, {transform_indices = @transform_4, window_bounds = array<i64: 8, 128>}, {transform_indices = @transform_5, window_bounds = array<i64: 1, 128>}]} {
    %c0 = arith.constant 0 : index
    %c0_0 = arith.constant 0 : index
    %0 = vector.load %arg1[%c0, %c0_0] : memref<8x16xf32, #tpu.memory_space<vmem>>, vector<8x16xf32>
    %1 = arith.truncf %0 : vector<8x16xf32> to vector<8x16xbf16>
    %c0_1 = arith.constant 0 : index
    %c0_2 = arith.constant 0 : index
    %2 = vector.load %arg2[%c0_1, %c0_2] : memref<272x128xbf16, #tpu.memory_space<vmem>>, vector<16x128xbf16>
    %c16 = arith.constant 16 : index
    %c0_3 = arith.constant 0 : index
    %3 = vector.load %arg2[%c16, %c0_3] : memref<272x128xbf16, #tpu.memory_space<vmem>>, vector<256x128xbf16>
    %c0_4 = arith.constant 0 : index
    %c0_5 = arith.constant 0 : index
    %4 = vector.load %arg3[%c0_4, %c0_5] : memref<128x256xbf16, #tpu.memory_space<vmem>>, vector<128x256xbf16>
    %c0_6 = arith.constant 0 : index
    %c0_7 = arith.constant 0 : index
    %5 = vector.load %arg4[%c0_6, %c0_7] : memref<1x512xf32, #tpu.memory_space<vmem>>, vector<1x128xf32>
    %c0_8 = arith.constant 0 : index
    %c128 = arith.constant 128 : index
    %6 = vector.load %arg4[%c0_8, %c128] : memref<1x512xf32, #tpu.memory_space<vmem>>, vector<1x256xf32>
    %c0_9 = arith.constant 0 : index
    %c384 = arith.constant 384 : index
    %7 = vector.load %arg4[%c0_9, %c384] : memref<1x512xf32, #tpu.memory_space<vmem>>, vector<1x128xf32>
    %cst = arith.constant dense<0.000000e+00> : vector<8x128xf32>
    %8 = tpu.matmul %1, %2, %cst {dimension_numbers = #tpu.dot_dimension_numbers<[1], [0], [0], [1], [0, 0, 1, 1], [], []>} : vector<8x16xbf16>, vector<16x128xbf16>, vector<8x128xf32> -> vector<8x128xf32>
    %9 = vector.broadcast %5 : vector<1x128xf32> to vector<8x128xf32>
    %10 = arith.addf %8, %9 : vector<8x128xf32>
    %cst_10 = arith.constant 1.000000e-01 : f32
    %11 = vector.broadcast %cst_10 : f32 to vector<8x128xf32>
    %12 = arith.mulf %11, %10 : vector<8x128xf32>
    %13 = arith.maximumf %10, %12 : vector<8x128xf32>
    %14 = arith.truncf %13 : vector<8x128xf32> to vector<8x128xbf16>
    %cst_11 = arith.constant dense<0.000000e+00> : vector<8x256xf32>
    %15 = tpu.matmul %14, %4, %cst_11 {dimension_numbers = #tpu.dot_dimension_numbers<[1], [0], [0], [1], [0, 0, 1, 1], [], []>} : vector<8x128xbf16>, vector<128x256xbf16>, vector<8x256xf32> -> vector<8x256xf32>
    %16 = vector.broadcast %6 : vector<1x256xf32> to vector<8x256xf32>
    %17 = arith.addf %15, %16 : vector<8x256xf32>
    %cst_12 = arith.constant 1.000000e-01 : f32
    %18 = vector.broadcast %cst_12 : f32 to vector<8x256xf32>
    %19 = arith.mulf %18, %17 : vector<8x256xf32>
    %20 = arith.maximumf %17, %19 : vector<8x256xf32>
    %21 = arith.truncf %20 : vector<8x256xf32> to vector<8x256xbf16>
    %cst_13 = arith.constant dense<0.000000e+00> : vector<8x128xf32>
    %22 = tpu.matmul %21, %3, %cst_13 {dimension_numbers = #tpu.dot_dimension_numbers<[1], [0], [0], [1], [0, 0, 1, 1], [], []>} : vector<8x256xbf16>, vector<256x128xbf16>, vector<8x128xf32> -> vector<8x128xf32>
    %23 = vector.broadcast %7 : vector<1x128xf32> to vector<8x128xf32>
    %24 = arith.addf %22, %23 : vector<8x128xf32>
    %c0_14 = arith.constant 0 : index
    %c0_15 = arith.constant 0 : index
    %25 = vector.load %arg5[%c0_14, %c0_15] : memref<8x128xf32, #tpu.memory_space<vmem>>, vector<8x128xf32>
    tpu.vector_store %arg5[%c0_14, %c0_15], %24 {strides = array<i32>} : memref<8x128xf32, #tpu.memory_space<vmem>>, vector<8x128xf32>,
    %c8_i32 = arith.constant 8 : i32
    %26 = arith.muli %arg0, %c8_i32 : i32
    %27 = tpu.iota {dimensions = array<i32: 0>} : vector<8x128xi32>
    %28 = vector.broadcast %26 : i32 to vector<8x128xi32>
    %29 = arith.addi %27, %28 : vector<8x128xi32>
    %c4_i32 = arith.constant 4 : i32
    %30 = vector.broadcast %c4_i32 : i32 to vector<8x128xi32>
    %31 = arith.cmpi slt, %29, %30 : vector<8x128xi32>
    %cst_16 = arith.constant 0.000000e+00 : f32
    %32 = vector.broadcast %cst_16 : f32 to vector<8x128xf32>
    %33 = arith.select %31, %24, %32 : vector<8x128xi1>, vector<8x128xf32>
    %cst_17 = arith.constant dense<0.000000e+00> : vector<128xf32>
    %34 = vector.multi_reduction <add>, %33, %cst_17 [0] : vector<8x128xf32> to vector<128xf32>
    %35 = vector.shape_cast %34 : vector<128xf32> to vector<1x128xf32>
    %c0_18 = arith.constant 0 : index
    %c0_19 = arith.constant 0 : index
    %36 = vector.load %arg6[%c0_18, %c0_19] : memref<1x128xf32, #tpu.memory_space<vmem>>, vector<1x128xf32>
    tpu.vector_store %arg6[%c0_18, %c0_19], %35 {strides = array<i32>} : memref<1x128xf32, #tpu.memory_space<vmem>>, vector<1x128xf32>,
    return
  }
  func.func @transform_0(%arg0: i32) -> (i32, i32) {
    %c0_i32 = arith.constant 0 : i32
    %c0_i32_0 = arith.constant 0 : i32
    return %arg0, %c0_i32 : i32, i32
  }
  func.func @transform_1(%arg0: i32) -> (i32, i32) {
    %c0_i32 = arith.constant 0 : i32
    %c0_i32_0 = arith.constant 0 : i32
    %c0_i32_1 = arith.constant 0 : i32
    return %c0_i32, %c0_i32_0 : i32, i32
  }
  func.func @transform_2(%arg0: i32) -> (i32, i32) {
    %c0_i32 = arith.constant 0 : i32
    %c0_i32_0 = arith.constant 0 : i32
    %c0_i32_1 = arith.constant 0 : i32
    return %c0_i32, %c0_i32_0 : i32, i32
  }
  func.func @transform_3(%arg0: i32) -> (i32, i32) {
    %c0_i32 = arith.constant 0 : i32
    %c0_i32_0 = arith.constant 0 : i32
    %c0_i32_1 = arith.constant 0 : i32
    return %c0_i32, %c0_i32_0 : i32, i32
  }
  func.func @transform_4(%arg0: i32) -> (i32, i32) {
    %c0_i32 = arith.constant 0 : i32
    %c0_i32_0 = arith.constant 0 : i32
    return %arg0, %c0_i32 : i32, i32
  }
  func.func @transform_5(%arg0: i32) -> (i32, i32) {
    %c0_i32 = arith.constant 0 : i32
    %c0_i32_0 = arith.constant 0 : i32
    return %arg0, %c0_i32 : i32, i32
  }
}

</mosaic_0001>

<bundles_post_ra>
// kernel: noisy_dueling_dqn_forward.1
= control target key start
LH: loop header
LB: loop body
LE: loop exit
PB: predicated region body
PF: predicated region fallthrough
CT: control target
= control target key end

     0   :  { %11 = vsyncpa [#allocation3], 0  ;;  %s801_s0 = inlined_call_operand.hbm [shape: f32[4,16], index: 0, kind: input, shape index: {}]   ;;  %s802_s1 = inlined_call_operand.hbm [shape: bf16[272,128], index: 1, kind: input, shape index: {}]   ;;  %s803_s2 = inlined_call_operand.hbm [shape: bf16[128,256], index: 2, kind: input, shape index: {}]   ;;  %s804_s3 = inlined_call_operand.vmem [shape: f32[1,512], index: 3, kind: input, shape index: {}]   ;;  %s805_s4 = inlined_call_operand.vmem [shape: f32[4,128], index: 4, kind: output, shape index: {0}]   ;;  %s806_s5 = inlined_call_operand.vmem [shape: f32[1,128], index: 5, kind: output, shape index: {1}]  }
   0x1   :  { %12 = vsyncpa [#allocation5], 0 }
   0x2   :  { %17 = vsyncadd [#allocation3], 64  ;;  %s702_s18 = smov [#allocation4]   ;;  %s703_s20 = smov [#allocation2]  }
   0x3   :  { %s30_s19 = sshll.u32 %s702_s18, 4  ;;  %s18_s21 = sshll.u32 %s703_s20, 4  ;;  %s31_s19 = int_to_ptr.vmem [resolvable:$true] %s30_s19  ;;  %s742_s21 = int_to_ptr.vmem [resolvable:$true] %s18_s21 }
   0x4   :  { %s632_s24 = scalar_lea.hbm %s802_s1, 2176 }
   0x5   :  { %p633_p0 = scmp.ne.s32.totalorder %s802_s1, %s632_s24  ;;  %p636_p1 = scmp.lt.u32.totalorder %s632_s24, %s802_s1 }
   0x7   :  { %p638_p2 = pnand %p636_p1, %p633_p0 }
   0x9   :  { %641 = shalt.err (!%p638_p2)
}
   0xa   :  { %s642_s29 = scalar_lea.vmem %s31_s19, 2176  ;;  %p647_p4 = scmp.lt.s32.totalorder %s31_s19, %s31_s19 }
   0xb   :  { %p643_p3 = scmp.ne.s32.totalorder %s31_s19, %s642_s29  ;;  %p648_p5 = scmp.lt.s32.totalorder %s642_s29, %s642_s29 }
   0xd   :  { %p649_p6 = por %p648_p5, %p647_p4 }
   0xf   :  { %p650_p7 = pnand %p649_p6, %p643_p3 }
  0x11   :  { %653 = shalt.err (!%p650_p7)
}
  0x12   :  { %s704_s30 = smov 64   ;;  %s705_s6 = smov 4  }
  0x13   :  { %36 = dma.hbm_to_vmem [thread:$0]  %s802_s1, 2176, %s31_s19, [#allocation5], %s704_s30, %s704_s30, %s705_s6  }
  0x14   :  { %s654_s11 = scalar_lea.hbm %s801_s0, 64 }
  0x15   :  { %p655_p8 = scmp.ne.s32.totalorder %s801_s0, %s654_s11  ;;  %p658_p9 = scmp.lt.u32.totalorder %s654_s11, %s801_s0 }
  0x17   :  { %p660_p10 = pnand %p658_p9, %p655_p8 }
  0x19   :  { %663 = shalt.err (!%p660_p10)
}
  0x1a   :  { %s664_s16 = scalar_lea.vmem %s742_s21, 64  ;;  %s668_s1 = scalar_lea.vmem %s742_s21, 128 }
  0x1b   :  { %p665_p11 = scmp.ne.s32.totalorder %s742_s21, %s664_s16  ;;  %p669_p12 = scmp.lt.s32.totalorder %s742_s21, %s742_s21 }
  0x1c   :  { %p670_p13 = scmp.lt.s32.totalorder %s668_s1, %s664_s16 }
  0x1e   :  { %p671_p0 = por %p670_p13, %p669_p12 }
  0x20   :  { %p672_p1 = pnand %p671_p0, %p665_p11 }
  0x22   :  { %675 = shalt.err (!%p672_p1)
}
  0x23   :  { %24 = dma.hbm_to_vmem [thread:$0]  %s801_s0, 64, %s742_s21, [#allocation3], %s704_s30, %s704_s30, %s705_s6  }
  0x24   :  { %s706_s19 = smov [#allocation6]   ;;  %s676_s24 = scalar_lea.hbm %s803_s2, 2048 }
  0x25   :  { %s42_s20 = sshll.u32 %s706_s19, 4  ;;  %p677_p2 = scmp.ne.s32.totalorder %s803_s2, %s676_s24  ;;  %s43_s20 = int_to_ptr.vmem [resolvable:$true] %s42_s20 }
  0x26   :  { %p680_p3 = scmp.lt.u32.totalorder %s676_s24, %s803_s2 }
  0x28   :  { %p682_p4 = pnand %p680_p3, %p677_p2 }
  0x2a   :  { %685 = shalt.err (!%p682_p4)
}
  0x2b   :  { %s686_s29 = scalar_lea.vmem %s43_s20, 2048  ;;  %p691_p6 = scmp.lt.s32.totalorder %s43_s20, %s43_s20 }
  0x2c   :  { %p687_p5 = scmp.ne.s32.totalorder %s43_s20, %s686_s29  ;;  %p692_p7 = scmp.lt.s32.totalorder %s686_s29, %s686_s29 }
  0x2e   :  { %p693_p8 = por %p692_p7, %p691_p6 }
  0x30   :  { %p694_p9 = pnand %p693_p8, %p687_p5 }
  0x32   :  { %697 = shalt.err (!%p694_p9)
}
  0x33   :  { %s707_s0 = smov 128   ;;  %s708_s21 = smov 8  }
  0x34   :  { %48 = dma.hbm_to_vmem [thread:$0]  %s803_s2, 2048, %s43_s20, [#allocation5], %s707_s0, %s707_s0, %s708_s21  }
  0x35   :  { %698 = dma.done.wait [#allocation3], 128  }
  0x36   :  { %699 = vsyncadd [#allocation3], 4294967168 }
  0x37   :  { %700 = dma.done.wait [#allocation5], 4224  }
  0x38   :  { %701 = vsyncadd [#allocation5], 4294963072  ;;  %v709_v0 = vmov 0.0   ;;  %vm710_vm0 = vmmov 0   ;;  %v591_v1 = vld [vmem:[#allocation4] sm:$0xff]   ;;  %v61_v2 = vld [vmem:[#allocation2] sm:$0xff]  ;;  %v176_v46 = vlaneseq }
  0x39   :  { %575 = vmatprep.subr.bf16.mxu0 %v709_v0  ;;  %577 = vmatprep.mubr.msk.bf16.mxu0 %vm710_vm0, %v709_v0  ;;  %v62_v3 = vpack.c.bf16 %v61_v2, %v61_v2  ;;  %vm128_vm1 = vcmask 130048   ;;  %v592_v4 = vld [vmem:[#allocation6 + $0x4] ss:$8 sps:$4 sm:$0xff]   ;;  %v594_v5 = vld [vmem:[#allocation6] ss:$8 sps:$4 sm:$0xff]   ;;  %v711_v20 = vmov 0  }
  0x3a   :  { %576 = vmatpush3.bf16.msra.mxu0 %v591_v1  ;;  %v595_v6 = vld [vmem:[#allocation6 + $0x14] ss:$8 sps:$4 sm:$0xff]   ;;  %266 = vmatprep.subr.bf16.mxu1 %v592_v4  ;;  %v597_v7 = vld [vmem:[#allocation6 + $0x10] ss:$8 sps:$4 sm:$0xff]   ;;  %v598_v8 = vld [vmem:[#allocation6 + $0x24] ss:$8 sps:$4 sm:$0xff]  }
  0x3b   :  { %267 = vmatpush1.bf16.msra.mxu1 %v594_v5  ;;  %v600_v9 = vld [vmem:[#allocation6 + $0x20] ss:$8 sps:$4 sm:$0xff]   ;;  %v601_v10 = vld [vmem:[#allocation6 + $0x34] ss:$8 sps:$4 sm:$0xff]   ;;  %v603_v11 = vld [vmem:[#allocation6 + $0x30] ss:$8 sps:$4 sm:$0xff]   ;;  %298 = vmatprep.mubr.bf16.mxu1 %v711_v20 }
  0x3c   :  { %268 = vmatprep.subr.bf16.mxu1 %v595_v6  ;;  %v604_v12 = vld [vmem:[#allocation6 + $0x44] ss:$8 sps:$4 sm:$0xff]   ;;  %v606_v13 = vld [vmem:[#allocation6 + $0x40] ss:$8 sps:$4 sm:$0xff]   ;;  %v607_v14 = vld [vmem:[#allocation6 + $0x54] ss:$8 sps:$4 sm:$0xff]  }
  0x3d   :  { %578 = vmatmul.mubr.msk.bf16.vlgmr.msra.gmra.mrb[0].mxu0 %vm128_vm1, %v62_v3  ;;  %v609_v15 = vld [vmem:[#allocation6 + $0x50] ss:$8 sps:$4 sm:$0xff]   ;;  %v610_v16 = vld [vmem:[#allocation6 + $0x64] ss:$8 sps:$4 sm:$0xff]   ;;  %v612_v17 = vld [vmem:[#allocation6 + $0x60] ss:$8 sps:$4 sm:$0xff]  }
  0x3e   :  { %v613_v18 = vld [vmem:[#allocation6 + $0x74] ss:$8 sps:$4 sm:$0xff]   ;;  %v615_v19 = vld [vmem:[#allocation6 + $0x70] ss:$8 sps:$4 sm:$0xff]   ;;  %v616_v21 = vld [vmem:[#allocation4 + $0x48] sm:$0xff]   ;;  %v177_v47 = vshrl.u32 %v176_v46, 7 }
  0x3f   :  { %269 = vmatpush1.bf16.msra.mxu1 %v597_v7  ;;  %v617_v22 = vld [vmem:[#allocation4 + $0x8] sm:$0xff]   ;;  %v618_v23 = vld [vmem:[#allocation4 + $0x50] sm:$0xff]   ;;  %553 = vmatprep.subr.bf16.mxu0 %v616_v21  ;;  %v620_v25 = vld [vmem:[#allocation4 + $0x58] sm:$0xff]  }
  0x40   :  { %270 = vmatprep.subr.bf16.mxu1 %v598_v8  ;;  %554 = vmatpush3.bf16.msra.mxu0 %v617_v22  ;;  %v619_v24 = vld [vmem:[#allocation4 + $0x10] sm:$0xff]   ;;  %v621_v26 = vld [vmem:[#allocation4 + $0x18] sm:$0xff]   ;;  %v622_v27 = vld [vmem:[#allocation4 + $0x60] sm:$0xff]   ;;  %v178_v48 = vsub.s32 0, %v177_v47  ;;  %v182_v50 = vsub.s32 1, %v177_v47  ;;  %vm461_vm2 = vcmp.lt.s32.totalorder %v177_v47, 4 }
  0x41   :  { %555 = vmatprep.subr.bf16.mxu0 %v618_v23  ;;  %v623_v28 = vld [vmem:[#allocation4 + $0x20] sm:$0xff]   ;;  %v624_v29 = vld [vmem:[#allocation4 + $0x68] sm:$0xff]   ;;  %v626_v31 = vld [vmem:[#allocation4 + $0x70] sm:$0xff]  }
  0x42   :  { %v625_v30 = vld [vmem:[#allocation4 + $0x28] sm:$0xff]   ;;  %v515_v32 = vld [vmem:[%s804_s3] ss:$0 sm:$0xff]  ;;  %v627_v41 = vld [vmem:[#allocation4 + $0x30] sm:$0xff]  }
  0x43   :  { %271 = vmatpush1.bf16.msra.mxu1 %v600_v9  ;;  %v628_v42 = vld [vmem:[#allocation4 + $0x78] sm:$0xff]   ;;  %v630_v44 = vld [vmem:[#allocation4 + $0x80] sm:$0xff]  }
  0x44   :  { %272 = vmatprep.subr.bf16.mxu1 %v601_v10  ;;  %556 = vmatpush3.bf16.msra.mxu0 %v619_v24  ;;  %v629_v43 = vld [vmem:[#allocation4 + $0x38] sm:$0xff]   ;;  %v631_v45 = vld [vmem:[#allocation4 + $0x40] sm:$0xff]  }
  0x45   :  { %557 = vmatprep.subr.bf16.mxu0 %v620_v25  ;;  %v114_v49 = vld [vmem:[%s804_s3 + $0x1] sm:$0x3]  ;;  %v534_v2 = vld [vmem:[%s804_s3 + $0x3] ss:$0 sm:$0xff] }
  0x46   :  { %v179_v51 = vrot.slane %v114_v49, %v178_v48  ;;  %v183_v52 = vrot.slane %v114_v49, %v182_v50 }
  0x47   :  { %273 = vmatpush1.bf16.msra.mxu1 %v603_v11 }
  0x48   :  { %274 = vmatprep.subr.bf16.mxu1 %v604_v12  ;;  %558 = vmatpush3.bf16.msra.mxu0 %v621_v26 }
  0x49   :  { %559 = vmatprep.subr.bf16.mxu0 %v622_v27 }
  0x4b   :  { %275 = vmatpush1.bf16.msra.mxu1 %v606_v13 }
  0x4c   :  { %276 = vmatprep.subr.bf16.mxu1 %v607_v14  ;;  %560 = vmatpush3.bf16.msra.mxu0 %v623_v28 }
  0x4d   :  { %561 = vmatprep.subr.bf16.mxu0 %v624_v29 }
  0x4f   :  { %277 = vmatpush1.bf16.msra.mxu1 %v609_v15 }
  0x50   :  { %278 = vmatprep.subr.bf16.mxu1 %v610_v16  ;;  %562 = vmatpush3.bf16.msra.mxu0 %v625_v30 }
  0x51   :  { %563 = vmatprep.subr.bf16.mxu0 %v626_v31 }
  0x53   :  { %279 = vmatpush1.bf16.msra.mxu1 %v612_v17 }
  0x54   :  { %280 = vmatprep.subr.bf16.mxu1 %v613_v18  ;;  %564 = vmatpush3.bf16.msra.mxu0 %v627_v41 }
  0x55   :  { %565 = vmatprep.subr.bf16.mxu0 %v628_v42 }
  0x57   :  { %281 = vmatpush1.bf16.msra.mxu1 %v615_v19 }
  0x58   :  { %566 = vmatpush3.bf16.msra.mxu0 %v629_v43 }
  0x59   :  { %567 = vmatprep.subr.bf16.mxu0 %v630_v44 }
  0x5c   :  { %568 = vmatpush3.bf16.msra.mxu0 %v631_v45 }
 0x110   :  { %v166_v33 = vpop.f32.mrb[0].mxu0 }
 0x111   :  { %v167_v34 = vadd.f32 %v515_v32, %v166_v33  ;;  %v579_v35 = vpop.f32.mrb[1].mxu0 }
 0x112   :  { %v169_v36 = vpop.f32.mrb[2].mxu0 }
 0x113   :  { %v172_v37 = vmul.f32 0.1, %v167_v34  ;;  %v580_v38 = vpop.f32.mrb[3].mxu0 }
 0x115   :  { %v173_v39 = vmax.f32 %v167_v34, %v172_v37 }
 0x117   :  { %v174_v40 = vpack.c.bf16 %v173_v39, %v173_v39 }
 0x119   :  { %299 = vmatmul.mubr.bf16.vlgmr.msra.gmra.mrb[0].mxu1 %v174_v40 }
 0x1ec   :  { %v300_v53 = vpop.f32.mrb[0].mxu1 }
 0x1ed   :  { %v301_v54 = vadd.f32 %v300_v53, %v179_v51  ;;  %v302_v55 = vpop.f32.mrb[1].mxu1 }
 0x1ee   :  { %v303_v56 = vadd.f32 %v302_v55, %v183_v52  ;;  %v304_v57 = vpop.f32.mrb[2].mxu1 }
 0x1ef   :  { %v307_v58 = vmul.f32 0.1, %v301_v54  ;;  %v305_v59 = vpop.f32.mrb[3].mxu1 }
 0x1f0   :  { %v308_v60 = vmul.f32 0.1, %v303_v56 }
 0x1f1   :  { %v309_v61 = vmax.f32 %v301_v54, %v307_v58 }
 0x1f2   :  { %v310_v62 = vmax.f32 %v303_v56, %v308_v60 }
 0x1f3   :  { %v311_v0 = vpack.c.bf16 %v309_v61, %v309_v61 }
 0x1f4   :  { %v312_v63 = vpack.c.bf16 %v310_v62, %v310_v62 }
 0x1f6   :  { %447 = vmatprep.mubr.bf16.mxu0 %v312_v63 }
 0x1f7   :  { %448 = vmatmul.mubr.bf16.vlgmr.msra.gmra.mrb[4].mxu0 %v311_v0 }
 0x2ca   :  { %v569_v1 = vpop.f32.mrb[4].mxu0 }
 0x2cb   :  { %v570_v3 = vpop.f32.mrb[5].mxu0 }
 0x2cc   :  { %v571_v4 = vadd.f32 %v570_v3, %v569_v1  ;;  %v572_v5 = vpop.f32.mrb[6].mxu0 }
 0x2cd   :  { %v573_v6 = vpop.f32.mrb[7].mxu0 }
 0x2ce   :  { %v450_v7 = vadd.f32 %v571_v4, %v534_v2 }
 0x2d0   :  { %455 = vst [vmem:[#allocation7] sm:$0xff] %v450_v7  ;;  %v462_v8 = vsel %vm461_vm2, %v450_v7, 0.0 }
 0x2d1   :  { %v463_v9 = vrot.slane %v462_v8, 4 }
 0x2d3   :  { %v464_v10 = vadd.f32 %v463_v9, %v462_v8 }
 0x2d5   :  { %v465_v11 = vrot.slane %v464_v10, 2 }
 0x2d7   :  { %v466_v12 = vadd.f32 %v465_v11, %v464_v10  ;;  %v487_v13 = vld [vmem:[#allocation7] sm:$0xf] }
 0x2d8   :  { %488 = vst [vmem:[%s805_s4] sm:$0xf] %v487_v13 }
 0x2d9   :  { %v467_v14 = vrot.slane %v466_v12, 1 }
 0x2db   :  { %v468_v15 = vadd.f32 %v467_v14, %v466_v12 }
 0x2dd   :  { %469 = vst [vmem:[%s806_s5] sm:$0x1] %v468_v15 }
 0x2de   :  { %509 = vsyncpa [#allocation3], 1 }
 0x2df   :  { %510 = vsyncpa [#allocation5], 1 }

</bundles_post_ra>
